<compile_context>
chip_gen: v7x
topology: tpu7x:2x2x1
jax: 0.10.0
libtpu: 0.0.40
codegen_flags: <defaults>
</compile_context>

<pallas_src>
import functools

import jax
import jax.numpy as jnp
from jax import lax
from jax.experimental import pallas as pl
from jax.experimental.pallas import tpu as pltpu

# params.* from the original repo, chosen small & deterministic here.
NUM_OF_QUESTIONS = 32
MAX_STEP = 8


def _dkt_loss_kernel(pred_ref, batch_ref, out_ref, *, S, T, Q, BS):
    """One grid step = one block of BS students in the original layout.

    pred_ref  : (BS, T, Q)   f32
    batch_ref : (BS, T, 2Q)  f32
    out_ref   : (1, 1, 128)  f32   -- per-block partial loss, stored in lane 0
    """
    Tm1 = T - 1
    b = pl.program_id(0)

    # Time-shift alignment and corr/wrong split as static slices of the block.
    pred = pred_ref[:, :Tm1, :]            # (BS, T-1, Q)
    corr = batch_ref[:, 1:, :Q]            # (BS, T-1, Q)
    wrong = batch_ref[:, 1:, Q:]           # (BS, T-1, Q)

    delta = corr + wrong                   # one-hot of the question attempted at t+1
    p = jnp.sum(pred * delta, axis=2)      # (BS, T-1): pred[i] . delta[i+1]
    diff = jnp.sum(corr - wrong, axis=2)   # (BS, T-1)
    a = jnp.floor((diff + 1.0) * 0.5)      # exact ((sum + 1) // 2) reference formula

    # Tail-block guard: the last block may extend past S; those rows hold
    # undefined data, so mask them out explicitly.
    sid = b * BS + lax.broadcasted_iota(jnp.int32, (BS, Tm1), 0)
    mask = jnp.logical_and(p > 0.0, sid < S)

    # Guard log() on masked entries only (no clipping -> matches reference math).
    p_safe = jnp.where(mask, p, 0.5)
    bce = a * jnp.log(p_safe) + (1.0 - a) * jnp.log(1.0 - p_safe)
    total = jnp.sum(jnp.where(mask, bce, 0.0))     # scalar partial for this block

    # Lane-dense, fully-specified store: block total in lane 0, zeros elsewhere.
    lane = lax.broadcasted_iota(jnp.int32, (1, 1, 128), 2)
    out_ref[...] = jnp.where(lane == 0, -total, 0.0)


def dkt_loss(pred, batch):
    S, T, Q = pred.shape
    assert batch.shape == (S, T, 2 * Q)
    assert T == MAX_STEP and Q == NUM_OF_QUESTIONS, "shapes must match params.*"

    pred = pred.astype(jnp.float32)     # no-op for f32 inputs
    batch = batch.astype(jnp.float32)

    # ---- per-generation VMEM budget -> student block size ----------------------
    try:
        vmem_cap = int(pltpu.get_tpu_info().vmem_capacity_bytes)
    except Exception:  # interpret mode / older runtimes: assume the smallest (v7x) VMEM
        vmem_cap = 64 * 1024 * 1024
    budget = min(vmem_cap // 2, 40 * 1024 * 1024)

    def pad_lanes(n):
        return -(-n // 128) * 128

    # Double-buffered VMEM per student; minor dims pad to 128 lanes in VMEM.
    per_student_vmem = 2 * 4 * T * (pad_lanes(Q) + pad_lanes(2 * Q))

    bs_cap = max(8, (budget // per_student_vmem) // 8 * 8)
    bs_cap = min(bs_cap, 4096)            # diminishing returns past ~4K students/block
    BS = min(bs_cap, S)
    nblk = pl.cdiv(S, BS)

    # v7x megacore: prefer an even number of blocks so both TensorCores get work.
    if nblk > 1 and nblk % 2 == 1:
        bs_even = -(-S // (nblk + 1))     # ceil(S / (nblk + 1))
        bs_even = -(-bs_even // 8) * 8    # round up to a multiple of 8
        if bs_even >= 8 and pl.cdiv(S, bs_even) % 2 == 0:
            BS = bs_even
            nblk = pl.cdiv(S, BS)

    vmem_needed = BS * per_student_vmem + (2 << 20)
    vmem_limit = int(min(max(vmem_needed, 16 << 20), budget + (8 << 20)))

    kernel = functools.partial(_dkt_loss_kernel, S=S, T=T, Q=Q, BS=BS)

    partial = pl.pallas_call(
        kernel,
        out_shape=jax.ShapeDtypeStruct((nblk, 1, 128), jnp.float32),
        grid_spec=pltpu.PrefetchScalarGridSpec(
            num_scalar_prefetch=0,
            grid=(nblk,),
            in_specs=[
                pl.BlockSpec((BS, T, Q), lambda b: (b, 0, 0)),
                pl.BlockSpec((BS, T, 2 * Q), lambda b: (b, 0, 0)),
            ],
            out_specs=pl.BlockSpec((1, 1, 128), lambda b: (b, 0, 0)),
        ),
        compiler_params=pltpu.CompilerParams(
            dimension_semantics=("parallel",),   # per-block partial sums, no carry
            vmem_limit_bytes=vmem_limit,
        ),
    )(pred, batch)

    # Final tiny reduction of the (nblk, 1, 128) partials; torch.Tensor([0.0]) shape (1,)
    return jnp.sum(partial).reshape(1)


def ref_loss(pred, batch):
    """Pure-JAX reference mirroring the PyTorch loop exactly."""
    S, T, Q = pred.shape
    delta = batch[:, :, :Q] + batch[:, :, Q:]
    p = jnp.sum(pred[:, : T - 1, :] * delta[:, 1:, :], axis=-1)
    a = jnp.floor((jnp.sum(batch[:, :, :Q] - batch[:, :, Q:], axis=-1) + 1.0) / 2.0)[:, 1:]
    mask = p > 0.0
    ps = jnp.where(mask, p, 0.5)
    bce = a * jnp.log(ps) + (1.0 - a) * jnp.log(1.0 - ps)
    return -jnp.sum(jnp.where(mask, bce, 0.0)).reshape(1)


if __name__ == "__main__":
    S, T, Q = 2, MAX_STEP, NUM_OF_QUESTIONS

    key = jax.random.PRNGKey(0)
    k1, k2, k3 = jax.random.split(key, 3)

    # Synthetic DKT inputs: one-hot question ids split by correctness.
    qids = jax.random.randint(k1, (S, T), 0, Q)
    corr = jax.random.bernoulli(k2, 0.6, (S, T)).astype(jnp.float32)
    onehot = jax.nn.one_hot(qids, Q, dtype=jnp.float32)
    batch = jnp.concatenate(
        [onehot * corr[..., None], onehot * (1.0 - corr[..., None])], axis=-1
    )  # (S, T, 2Q)

    pred = jax.nn.sigmoid(jax.random.normal(k3, (S, T, Q), dtype=jnp.float32))  # (S, T, Q)

    out = dkt_loss(pred, batch)
    out = jax.block_until_ready(out)

    ref = ref_loss(pred, batch)
    assert jnp.allclose(out, ref, rtol=1e-5, atol=1e-5), (out, ref)

    print("KERNEL_OK")
</pallas_src>

<mosaic_0001>
module attributes {stable_mosaic.version = 11 : i64} {
  func.func @_dkt_loss_kernel(%arg0: i32, %arg1: memref<2x8x32xf32, #tpu.memory_space<vmem>>, %arg2: memref<2x8x64xf32, #tpu.memory_space<vmem>>, %arg3: memref<1x1x128xf32, #tpu.memory_space<vmem>>) attributes {dimension_semantics = [#tpu.dimension_semantics<parallel>], iteration_bounds = array<i64: 1>, scalar_prefetch = 0 : i64, scratch_operands = 0 : i64, tpu.core_type = #tpu.core_type<tc>, window_params = [{transform_indices = @transform_0, window_bounds = array<i64: 2, 8, 32>}, {transform_indices = @transform_1, window_bounds = array<i64: 2, 8, 64>}, {transform_indices = @transform_2, window_bounds = array<i64: 1, 1, 128>}]} {
    %c0 = arith.constant 0 : index
    %c0_0 = arith.constant 0 : index
    %c0_1 = arith.constant 0 : index
    %0 = vector.load %arg1[%c0, %c0_0, %c0_1] : memref<2x8x32xf32, #tpu.memory_space<vmem>>, vector<2x7x32xf32>
    %c0_2 = arith.constant 0 : index
    %c1 = arith.constant 1 : index
    %c0_3 = arith.constant 0 : index
    %1 = vector.load %arg2[%c0_2, %c1, %c0_3] : memref<2x8x64xf32, #tpu.memory_space<vmem>>, vector<2x7x32xf32>
    %c0_4 = arith.constant 0 : index
    %c1_5 = arith.constant 1 : index
    %c32 = arith.constant 32 : index
    %2 = vector.load %arg2[%c0_4, %c1_5, %c32] : memref<2x8x64xf32, #tpu.memory_space<vmem>>, vector<2x7x32xf32>
    %3 = arith.addf %1, %2 : vector<2x7x32xf32>
    %4 = arith.mulf %0, %3 : vector<2x7x32xf32>
    %cst = arith.constant dense<0.000000e+00> : vector<2x7xf32>
    %5 = vector.multi_reduction <add>, %4, %cst [2] : vector<2x7x32xf32> to vector<2x7xf32>
    %6 = arith.subf %1, %2 : vector<2x7x32xf32>
    %cst_6 = arith.constant dense<0.000000e+00> : vector<2x7xf32>
    %7 = vector.multi_reduction <add>, %6, %cst_6 [2] : vector<2x7x32xf32> to vector<2x7xf32>
    %cst_7 = arith.constant 1.000000e+00 : f32
    %8 = vector.broadcast %cst_7 : f32 to vector<2x7xf32>
    %9 = arith.addf %7, %8 : vector<2x7xf32>
    %cst_8 = arith.constant 5.000000e-01 : f32
    %10 = vector.broadcast %cst_8 : f32 to vector<2x7xf32>
    %11 = arith.mulf %9, %10 : vector<2x7xf32>
    %12 = math.floor %11 : vector<2x7xf32>
    %c2_i32 = arith.constant 2 : i32
    %13 = arith.muli %arg0, %c2_i32 : i32
    %14 = tpu.iota {dimensions = array<i32: 0>} : vector<2x7xi32>
    %15 = vector.broadcast %13 : i32 to vector<2x7xi32>
    %16 = arith.addi %15, %14 : vector<2x7xi32>
    %cst_9 = arith.constant 0.000000e+00 : f32
    %17 = vector.broadcast %cst_9 : f32 to vector<2x7xf32>
    %18 = arith.cmpf ogt, %5, %17 : vector<2x7xf32>
    %c2_i32_10 = arith.constant 2 : i32
    %19 = vector.broadcast %c2_i32_10 : i32 to vector<2x7xi32>
    %20 = arith.cmpi slt, %16, %19 : vector<2x7xi32>
    %21 = arith.andi %18, %20 : vector<2x7xi1>
    %cst_11 = arith.constant 5.000000e-01 : f32
    %22 = vector.broadcast %cst_11 : f32 to vector<2x7xf32>
    %23 = arith.select %21, %5, %22 : vector<2x7xi1>, vector<2x7xf32>
    %24 = math.log %23 : vector<2x7xf32>
    %25 = arith.mulf %12, %24 : vector<2x7xf32>
    %cst_12 = arith.constant 1.000000e+00 : f32
    %26 = vector.broadcast %cst_12 : f32 to vector<2x7xf32>
    %27 = arith.subf %26, %12 : vector<2x7xf32>
    %cst_13 = arith.constant 1.000000e+00 : f32
    %28 = vector.broadcast %cst_13 : f32 to vector<2x7xf32>
    %29 = arith.subf %28, %23 : vector<2x7xf32>
    %30 = math.log %29 : vector<2x7xf32>
    %31 = arith.mulf %27, %30 : vector<2x7xf32>
    %32 = arith.addf %25, %31 : vector<2x7xf32>
    %cst_14 = arith.constant 0.000000e+00 : f32
    %33 = vector.broadcast %cst_14 : f32 to vector<2x7xf32>
    %34 = arith.select %21, %32, %33 : vector<2x7xi1>, vector<2x7xf32>
    %35 = vector.shape_cast %34 : vector<2x7xf32> to vector<1x2x7xf32>
    %cst_15 = arith.constant dense<0.000000e+00> : vector<1xf32>
    %36 = vector.multi_reduction <add>, %35, %cst_15 [1, 2] : vector<1x2x7xf32> to vector<1xf32>
    %37 = vector.shape_cast %36 : vector<1xf32> to vector<1x1x1xf32>
    %38 = vector.extract %37[0, 0, 0] : f32 from vector<1x1x1xf32>
    %39 = tpu.iota {dimensions = array<i32: 2>} : vector<1x1x128xi32>
    %c0_i32 = arith.constant 0 : i32
    %40 = vector.broadcast %c0_i32 : i32 to vector<1x1x128xi32>
    %41 = arith.cmpi eq, %39, %40 : vector<1x1x128xi32>
    %cst_16 = arith.constant 0.000000e+00 : f32
    %42 = arith.subf %cst_16, %38 : f32
    %cst_17 = arith.constant 0.000000e+00 : f32
    %43 = vector.broadcast %42 : f32 to vector<1x1x128xf32>
    %44 = vector.broadcast %cst_17 : f32 to vector<1x1x128xf32>
    %45 = arith.select %41, %43, %44 : vector<1x1x128xi1>, vector<1x1x128xf32>
    %c0_18 = arith.constant 0 : index
    %c0_19 = arith.constant 0 : index
    %c0_20 = arith.constant 0 : index
    %46 = vector.load %arg3[%c0_18, %c0_19, %c0_20] : memref<1x1x128xf32, #tpu.memory_space<vmem>>, vector<1x1x128xf32>
    tpu.vector_store %arg3[%c0_18, %c0_19, %c0_20], %45 {strides = array<i32>} : memref<1x1x128xf32, #tpu.memory_space<vmem>>, vector<1x1x128xf32>,
    return
  }
  func.func @transform_0(%arg0: i32) -> (i32, i32, i32) {
    %c0_i32 = arith.constant 0 : i32
    %c0_i32_0 = arith.constant 0 : i32
    %c0_i32_1 = arith.constant 0 : i32
    return %arg0, %c0_i32, %c0_i32_0 : i32, i32, i32
  }
  func.func @transform_1(%arg0: i32) -> (i32, i32, i32) {
    %c0_i32 = arith.constant 0 : i32
    %c0_i32_0 = arith.constant 0 : i32
    %c0_i32_1 = arith.constant 0 : i32
    return %arg0, %c0_i32, %c0_i32_0 : i32, i32, i32
  }
  func.func @transform_2(%arg0: i32) -> (i32, i32, i32) {
    %c0_i32 = arith.constant 0 : i32
    %c0_i32_0 = arith.constant 0 : i32
    %c0_i32_1 = arith.constant 0 : i32
    return %arg0, %c0_i32, %c0_i32_0 : i32, i32, i32
  }
}

</mosaic_0001>

<bundles_post_ra>
// kernel: tpu_custom_call.1
= control target key start
LH: loop header
LB: loop body
LE: loop exit
PB: predicated region body
PF: predicated region fallthrough
CT: control target
= control target key end

     0   :  { %7 = vsyncpa [#allocation3], 0  ;;  %s342_s0 = inlined_call_operand.hbm [shape: f32[2,8,32], index: 0, kind: input, shape index: {}]   ;;  %s343_s1 = inlined_call_operand.hbm [shape: f32[2,8,64], index: 1, kind: input, shape index: {}]   ;;  %s344_s2 = inlined_call_operand.hbm [shape: f32[1,1,128], index: 2, kind: output, shape index: {}]  }
   0x1   :  { %8 = vsyncpa [#allocation6], 0 }
   0x2   :  { %9 = vsyncpa [#allocation4], 0  ;;  %s264_s9 = smov [#allocation2]   ;;  %s192_s13 = scalar_lea.hbm %s342_s0, 256 }
   0x3   :  { %s15_s10 = sshll.u32 %s264_s9, 4  ;;  %p193_p0 = scmp.ne.s32.totalorder %s342_s0, %s192_s13  ;;  %s16_s10 = int_to_ptr.vmem [resolvable:$true] %s15_s10 }
   0x4   :  { %p196_p1 = scmp.lt.u32.totalorder %s192_s13, %s342_s0 }
   0x6   :  { %p198_p2 = pnand %p196_p1, %p193_p0 }
   0x8   :  { %201 = shalt.err (!%p198_p2)
}
   0x9   :  { %s202_s18 = scalar_lea.vmem %s16_s10, 256  ;;  %p207_p4 = scmp.lt.s32.totalorder %s16_s10, %s16_s10 }
   0xa   :  { %p203_p3 = scmp.ne.s32.totalorder %s16_s10, %s202_s18  ;;  %p208_p5 = scmp.lt.s32.totalorder %s202_s18, %s202_s18 }
   0xc   :  { %p209_p6 = por %p208_p5, %p207_p4 }
   0xe   :  { %p210_p7 = pnand %p209_p6, %p203_p3 }
  0x10   :  { %213 = shalt.err (!%p210_p7)
}
  0x11   :  { %s265_s19 = smov 128   ;;  %s266_s20 = smov 8  }
  0x12   :  { %21 = dma.hbm_to_vmem [thread:$0]  %s342_s0, 256, %s16_s10, [#allocation3], %s265_s19, %s265_s19, %s266_s20  }
  0x13   :  { %s267_s23 = smov [#allocation5]   ;;  %s214_s27 = scalar_lea.hbm %s343_s1, 256 }
  0x14   :  { %s27_s24 = sshll.u32 %s267_s23, 4  ;;  %p215_p8 = scmp.ne.s32.totalorder %s343_s1, %s214_s27  ;;  %s28_s24 = int_to_ptr.vmem [resolvable:$true] %s27_s24 }
  0x15   :  { %p218_p9 = scmp.lt.u32.totalorder %s214_s27, %s343_s1 }
  0x17   :  { %p220_p10 = pnand %p218_p9, %p215_p8 }
  0x19   :  { %223 = shalt.err (!%p220_p10)
}
  0x1a   :  { %s224_s4 = scalar_lea.vmem %s28_s24, 256  ;;  %p229_p12 = scmp.lt.s32.totalorder %s28_s24, %s28_s24 }
  0x1b   :  { %p225_p11 = scmp.ne.s32.totalorder %s28_s24, %s224_s4  ;;  %p230_p13 = scmp.lt.s32.totalorder %s224_s4, %s224_s4 }
  0x1d   :  { %p231_p0 = por %p230_p13, %p229_p12 }
  0x1f   :  { %p232_p1 = pnand %p231_p0, %p225_p11 }
  0x21   :  { %235 = shalt.err (!%p232_p1)
}
  0x22   :  { %33 = dma.hbm_to_vmem [thread:$0]  %s343_s1, 256, %s28_s24, [#allocation6], %s265_s19, %s265_s19, %s266_s20  }
  0x23   :  { %258 = dma.done.wait [#allocation3], 256  }
  0x24   :  { %259 = vsyncadd [#allocation3], 4294967040 }
  0x25   :  { %260 = dma.done.wait [#allocation6], 256  }
  0x26   :  { %261 = vsyncadd [#allocation6], 4294967040  ;;  %v42_v0 = vld [vmem:[#allocation5 + $0x1] sm:$0x7f]  ;;  %s268_s6 = smov 96   ;;  %vm56_vm0 = vcmask 260096   ;;  %v78_v17 = vlaneseq }
  0x27   :  { %46 = vrot.lane.b32.xlu0 %v42_v0, %s268_s6  ;;  %v43_v1 = vld [vmem:[#allocation5 + $0x9] sm:$0x7f]  ;;  %v40_v3 = vld [vmem:[#allocation2] sm:$0x7f]  ;;  %v41_v9 = vld [vmem:[#allocation2 + $0x8] sm:$0x7f] }
  0x28   :  { %v269_v16 = vmov 0   ;;  %v79_v18 = vshrl.u32 %v78_v17, 7  ;;  %v129_v58 = vand.u32 127, %v78_v17  ;;  %vm138_vm8 = vcmask 1041409   ;;  %s270_s7 = smov [#allocation7]  }
  0x29   :  { %182 = vset.pattern.permute.xlu1 %v269_v16  ;;  %183 = vset.pattern.permute.xlu0 %v269_v16  ;;  %vm141_vm9 = vcmask 50176   ;;  %s163_s8 = sshll.u32 %s270_s7, 4  ;;  %s164_s8 = int_to_ptr.vmem [resolvable:$true] %s163_s8 }
  0x2a   :  { %vm84_vm1 = vcmp.lt.s32.totalorder %v79_v18, 2  ;;  %v88_v19 = vsub.s32 0, %v79_v18  ;;  %v92_v22 = vsub.s32 1, %v79_v18  ;;  %v132_v60 = vsub.s32 %v129_v58, %v79_v18  ;;  %s236_s10 = scalar_lea.vmem %s164_s8, 16  ;;  %s240_s11 = scalar_lea.vmem %s164_s8, 32 }
  0x2b   :  { %48 = vrot.lane.b32.xlu0 %v43_v1, %s268_s6  ;;  %v85_v20 = vsel %vm84_vm1, 1, %v269_v16  ;;  %vm152_vm10 = vcmp.eq.s32.totalorder %v129_v58, 0  ;;  %p237_p2 = scmp.ne.s32.totalorder %s164_s8, %s236_s10  ;;  %p241_p3 = scmp.lt.s32.totalorder %s164_s8, %s164_s8 }
  0x2c   :  { %v89_v21 = vrot.slane %v85_v20, %v88_v19  ;;  %v93_v23 = vrot.slane %v85_v20, %v92_v22  ;;  %p242_p4 = scmp.lt.s32.totalorder %s240_s11, %s236_s10 }
  0x2e   :  { %vm94_vm2 = vcmp.ne.s32.totalorder %v89_v21, 0  ;;  %vm95_vm5 = vcmp.ne.s32.totalorder %v93_v23, 0  ;;  %p243_p5 = por %p242_p4, %p241_p3 }
  0x30   :  { %p244_p6 = pnand %p243_p5, %p237_p2 }
  0x99   :  { %v47_v2 = vpop.permute.xlu0 %46 }
  0x9a   :  { %v52_v4 = vadd.f32 %v47_v2, %v42_v0  ;;  %v63_v5 = vsub.f32 %v42_v0, %v47_v2 }
  0x9c   :  { %v65_v6 = vsel %vm56_vm0, %v63_v5, 0.0  ;;  %v54_v7 = vmul.f32 %v52_v4, %v40_v3 }
  0x9d   :  { %66 = vadd.xlane.f32.xlu0 %v65_v6  ;;  %v49_v8 = vpop.permute.xlu0 %48 }
  0x9e   :  { %v53_v10 = vadd.f32 %v49_v8, %v43_v1  ;;  %v57_v11 = vsel %vm56_vm0, %v54_v7, 0.0  ;;  %v64_v13 = vsub.f32 %v43_v1, %v49_v8 }
  0x9f   :  { %58 = vadd.xlane.f32.xlu1 %v57_v11 }
  0xa0   :  { %v55_v12 = vmul.f32 %v53_v10, %v41_v9  ;;  %v68_v15 = vsel %vm56_vm0, %v64_v13, 0.0 }
  0xa2   :  { %v60_v14 = vsel %vm56_vm0, %v55_v12, 0.0 }
  0xa3   :  { %61 = vadd.xlane.f32.xlu1 %v60_v14 }
  0xa7   :  { %69 = vadd.xlane.f32.xlu1 %v68_v15 }
 0x12a   :  { %v67_v25 = vpop.xlane.xlu0 %66 }
 0x12b   :  { %v71_v30 = vadd.f32 1.0, %v67_v25 }
 0x12c   :  { %v59_v24 = vpop.xlane.xlu1 %58 }
 0x12d   :  { %vm82_vm3 = vcmp.gt.f32.partialorder %v59_v24, 0.0  ;;  %v73_v35 = vmul.f32 0.5, %v71_v30 }
 0x12e   :  { %vm314_vm4 = vmand %vm82_vm3, %vm94_vm2 }
 0x12f   :  { %v98_v27 = vsel %vm314_vm4, %v59_v24, 0.5  ;;  %v75_v37 = vfloor.f32 %v73_v35 }
 0x130   :  { %184 = vlog2.f32 %v98_v27  ;;  %v108_v28 = vsub.f32 1.0, %v98_v27  ;;  %v62_v29 = vpop.xlane.xlu1 %61 }
 0x131   :  { %vm83_vm6 = vcmp.gt.f32.partialorder %v62_v29, 0.0  ;;  %v106_v42 = vsub.f32 1.0, %v75_v37 }
 0x132   :  { %186 = vlog2.f32 %v108_v28  ;;  %vm320_vm7 = vmand %vm83_vm6, %vm95_vm5 }
 0x133   :  { %v99_v32 = vsel %vm320_vm7, %v62_v29, 0.5 }
 0x134   :  { %188 = vlog2.f32 %v99_v32  ;;  %v109_v33 = vsub.f32 1.0, %v99_v32  ;;  %v70_v34 = vpop.xlane.xlu1 %69 }
 0x135   :  { %v72_v36 = vadd.f32 1.0, %v70_v34 }
 0x136   :  { %190 = vlog2.f32 %v109_v33 }
 0x137   :  { %v74_v38 = vmul.f32 0.5, %v72_v36 }
 0x139   :  { %v76_v44 = vfloor.f32 %v74_v38 }
 0x13a   :  { %v185_v39 = vpop.eup %184 }
 0x13b   :  { %v101_v40 = vmul.f32 0.6931472, %v185_v39  ;;  %v107_v51 = vsub.f32 1.0, %v76_v44 }
 0x13c   :  { %v187_v41 = vpop.eup %186 }
 0x13d   :  { %v111_v43 = vmul.f32 0.6931472, %v187_v41  ;;  %v104_v47 = vmul.f32 %v101_v40, %v75_v37 }
 0x13e   :  { %v189_v45 = vpop.eup %188 }
 0x13f   :  { %v103_v46 = vmul.f32 0.6931472, %v189_v45  ;;  %v114_v48 = vmul.f32 %v111_v43, %v106_v42 }
 0x140   :  { %v191_v49 = vpop.eup %190 }
 0x141   :  { %v113_v50 = vmul.f32 0.6931472, %v191_v49  ;;  %v116_v52 = vadd.f32 %v114_v48, %v104_v47  ;;  %v105_v53 = vmul.f32 %v103_v46, %v76_v44 }
 0x143   :  { %v115_v54 = vmul.f32 %v113_v50, %v107_v51  ;;  %v118_v55 = vsel %vm314_vm4, %v116_v52, 0.0 }
 0x144   :  { %123 = vperm.xlu1 %182, %v118_v55  }
 0x145   :  { %v117_v56 = vadd.f32 %v115_v54, %v105_v53 }
 0x147   :  { %v119_v57 = vsel %vm320_vm7, %v117_v56, 0.0 }
 0x148   :  { %126 = vperm.xlu1 %182, %v119_v57  }
 0x1c3   :  { %v124_v59 = vpop.permute.xlu1 %123 }
 0x1c4   :  { %v133_v62 = vrot.slane %v124_v59, %v132_v60 }
 0x1c7   :  { %v127_v61 = vpop.permute.xlu1 %126 }
 0x1c8   :  { %v137_v63 = vrot.slane %v127_v61, %v132_v60 }
 0x1ca   :  { %v139_v0 = vsel %vm138_vm8, %v137_v63, %v133_v62 }
 0x1cb   :  { %v142_v1 = vsel %vm141_vm9, %v139_v0, 0.0 }
 0x1cc   :  { %143 = vadd.xlane.f32.xlu1 %v142_v1 }
 0x259   :  { %v144_v2 = vpop.xlane.xlu1 %143 }
 0x25a   :  { %v145_v3 = vrot.slane %v144_v2, 4 }
 0x25c   :  { %v146_v4 = vadd.f32 %v145_v3, %v144_v2 }
 0x25e   :  { %v147_v5 = vrot.slane %v146_v4, 2 }
 0x260   :  { %v148_v6 = vadd.f32 %v147_v5, %v146_v4 }
 0x262   :  { %v149_v7 = vrot.slane %v148_v6, 1 }
 0x264   :  { %v150_v8 = vadd.f32 %v149_v7, %v148_v6 }
 0x266   :  { %173 = vpush %v150_v8 }
 0x297   :  { %s174_s1 = spop %173 }
 0x298   :  { %s153_s9 = ssub.f32 0.0, %s174_s1 }
 0x29a   :  { %v154_v9 = vstv %s153_s9 }
 0x29b   :  { %v155_v10 = vsel %vm152_vm10, %v154_v9, 0.0 }
 0x29c   :  { %156 = vst [vmem:[#allocation7] sm:$0x1] %v155_v10 }
 0x29d   :  { %247 = shalt.err (!%p244_p6)
}
 0x29e   :  { %s248_s14 = scalar_lea.hbm %s344_s2, 16 }
 0x29f   :  { %p249_p7 = scmp.ne.s32.totalorder %s344_s2, %s248_s14  ;;  %p252_p8 = scmp.lt.u32.totalorder %s248_s14, %s344_s2 }
 0x2a1   :  { %p254_p9 = pnand %p252_p8, %p249_p7 }
 0x2a3   :  { %257 = shalt.err (!%p254_p9)
}
 0x2a4   :  { %166 = dma.vmem_to_hbm [thread:$0]  %s164_s8, 16, %s344_s2, [#allocation4]  }
 0x2a5   :  { %262 = dma.done.wait [#allocation4], 16  }
 0x2a6   :  { %263 = vsyncadd [#allocation4], 4294967280 }
 0x2a7   :  { %170 = vsyncpa [#allocation3], 1 }
 0x2a8   :  { %171 = vsyncpa [#allocation6], 1 }
 0x2a9   :  { %172 = vsyncpa [#allocation4], 1 }

</bundles_post_ra>
